<compile_context>
chip_gen: v5e
topology: v5e:2x2
jax: 0.10.0
libtpu: 0.0.40
codegen_flags: <defaults>
</compile_context>

<pallas_src>
import jax
import jax.numpy as jnp
from jax.experimental import pallas as pl
from jax.experimental.pallas import tpu as pltpu


# ---------------------------------------------------------------------------
# Kernel: one grid step = (one feature group g) x (one batch tile b).
# ---------------------------------------------------------------------------
def _nam_kernel(x_ref, c1_ref, c0_ref, w1_ref, b1_ref, w2_ref, b2_ref, wl_ref,
                out_ref):
    x = x_ref[0]                                                  # [B_TILE, f_tile]

    # ExU shallow layer, rank-1 closed form:
    #   clip(x * colsum(exp(W0)) - b0 @ exp(W0), 0, 1)
    # c1_ref holds the per-feature column sums laid out as a scaled "repeat"
    # matrix [f_tile, f_tile*S]; c0_ref holds -(b0 @ exp(W0)) packed [1, f_tile*S].
    h = jnp.dot(x, c1_ref[0], preferred_element_type=jnp.float32) + c0_ref[0]
    h = jnp.clip(h, 0.0, 1.0)                                     # [B_TILE, FS]

    # Hidden ReLU layers, biases folded post-matmul: relu(h @ W - b @ W).
    h = jnp.maximum(
        jnp.dot(h, w1_ref[0], preferred_element_type=jnp.float32) + b1_ref[0],
        0.0)                                                      # [B_TILE, FH1]
    h = jnp.maximum(
        jnp.dot(h, w2_ref[0], preferred_element_type=jnp.float32) + b2_ref[0],
        0.0)                                                      # [B_TILE, FH2]

    # Per-feature linear heads (block-diagonal, no bias) -> [B_TILE, f_tile].
    out_ref[0] = jnp.dot(h, wl_ref[0], preferred_element_type=jnp.float32)


# ---------------------------------------------------------------------------
# Wrapper-side layout helpers.
# ---------------------------------------------------------------------------
def _block_diag(w, f_tile):
    """[F, din, dout] -> [F//f_tile, f_tile*din, f_tile*dout] block-diagonal."""
    f, din, dout = w.shape
    g = f // f_tile
    wg = w.reshape(g, f_tile, din, dout)
    eye = jnp.eye(f_tile, dtype=w.dtype)
    bd = wg[:, :, None, :, :] * eye[None, :, :, None, None]   # [G, T, T, din, dout]
    return bd.transpose(0, 1, 3, 2, 4).reshape(g, f_tile * din, f_tile * dout)


def _mxu_lane_target():
    """128 for <=v5 generations (128-wide MXU), 256 for v6e / v7x."""
    try:
        kind = jax.devices()[0].device_kind.lower()
    except Exception:
        return 256
    if any(v in kind for v in ("v2", "v3", "v4", "v5")):
        return 128
    return 256


def _pick_f_tile(f, s, target):
    """Largest divisor of F with f_tile*S <= target MXU lane width."""
    want = max(1, target // max(s, 1))
    for t in range(min(f, want), 0, -1):
        if f % t == 0:
            return t
    return 1


# ---------------------------------------------------------------------------
# Forward pass.
# ---------------------------------------------------------------------------
def nam_forward(x, params, *, b_tile_max=256):
    """x: [B, F] float32. Returns (sum_out [B], f_out [B, F])."""
    W0, b0, W1, b1, W2, b2, Wl, bias = params
    B, F = x.shape
    S = W0.shape[1]
    H1 = W1.shape[2]
    H2 = W2.shape[2]

    f_tile = _pick_f_tile(F, S, target=_mxu_lane_target())
    G = F // f_tile
    FS, FH1, FH2 = f_tile * S, f_tile * H1, f_tile * H2

    # Batch tiling (inner grid axis).  Keeps per-step VMEM bounded and fills
    # the MXU M rows; pad B to a multiple of the tile if needed.
    if B <= b_tile_max:
        B_TILE, B_pad = B, B
    else:
        B_TILE = b_tile_max
        B_pad = -(-B // B_TILE) * B_TILE
    NB = B_pad // B_TILE

    # ---- one-time layout / algebra plumbing in the wrapper (f32 throughout) ----
    expW0 = jnp.exp(W0)                                  # [F, S, S]
    c1 = expW0.sum(axis=1)                               # [F, S]   colsum(exp(W0))
    c0 = -jnp.matmul(b0, expW0)                          # [F, 1, S]  -(b0 @ exp(W0))
    b1p = -jnp.matmul(b1, W1)                            # [F, 1, H1] -(b1 @ W1)
    b2p = -jnp.matmul(b2, W2)                            # [F, 1, H2] -(b2 @ W2)

    # Rank-1 ExU "scaled repeat" matrix: C1[g, i, i*S + j] = c1[g*f_tile+i, j].
    eye = jnp.eye(f_tile, dtype=x.dtype)
    c1g = c1.reshape(G, f_tile, S)
    c1_bd = (c1g[:, :, None, :] * eye[None, :, :, None]).reshape(G, f_tile, FS)

    w1_bd = _block_diag(W1, f_tile)                      # [G, FS, FH1]
    w2_bd = _block_diag(W2, f_tile)                      # [G, FH1, FH2]
    wl_bd = _block_diag(Wl, f_tile)                      # [G, FH2, f_tile]

    c0_p = c0.reshape(G, 1, FS)
    b1_p = b1p.reshape(G, 1, FH1)
    b2_p = b2p.reshape(G, 1, FH2)

    # Lane-dense per-group input: [G, B_pad, f_tile] (no S-times repeat slab).
    if B_pad != B:
        x = jnp.pad(x, ((0, B_pad - B), (0, 0)))
    x_g = x.reshape(B_pad, G, f_tile).transpose(1, 0, 2)

    out_g = pl.pallas_call(
        _nam_kernel,
        out_shape=jax.ShapeDtypeStruct((G, B_pad, f_tile), jnp.float32),
        grid_spec=pltpu.PrefetchScalarGridSpec(
            num_scalar_prefetch=0,
            # Feature-group OUTER, batch-tile INNER: weight/bias blocks (index
            # depends only on g) stay resident across all batch tiles.
            grid=(G, NB),
            in_specs=[
                pl.BlockSpec((1, B_TILE, f_tile), lambda g, b: (g, b, 0)),  # x
                pl.BlockSpec((1, f_tile, FS),     lambda g, b: (g, 0, 0)),  # rank-1 ExU
                pl.BlockSpec((1, 1, FS),          lambda g, b: (g, 0, 0)),  # c0
                pl.BlockSpec((1, FS, FH1),        lambda g, b: (g, 0, 0)),  # W1 blkdiag
                pl.BlockSpec((1, 1, FH1),         lambda g, b: (g, 0, 0)),  # b1 folded
                pl.BlockSpec((1, FH1, FH2),       lambda g, b: (g, 0, 0)),  # W2 blkdiag
                pl.BlockSpec((1, 1, FH2),         lambda g, b: (g, 0, 0)),  # b2 folded
                pl.BlockSpec((1, FH2, f_tile),    lambda g, b: (g, 0, 0)),  # linear heads
            ],
            out_specs=pl.BlockSpec((1, B_TILE, f_tile), lambda g, b: (g, b, 0)),
        ),
        compiler_params=pltpu.CompilerParams(
            dimension_semantics=("parallel", "parallel")),  # no carried state
    )(x_g, c1_bd, c0_p, w1_bd, b1_p, w2_bd, b2_p, wl_bd)

    # Additive sum + global bias in the wrapper (trivial row-sum over [B, F]).
    f_out = out_g.transpose(1, 0, 2).reshape(B_pad, F)[:B]
    sum_out = f_out.sum(axis=-1) + bias
    return sum_out, f_out


# ---------------------------------------------------------------------------
# Pure-JAX reference mirroring the PyTorch forward (eval mode).
# ---------------------------------------------------------------------------
def nam_reference(x, params):
    W0, b0, W1, b1, W2, b2, Wl, bias = params
    F = x.shape[1]
    outs = []
    for i in range(F):
        xi = x[:, i:i + 1]
        h = jnp.clip((xi - b0[i, 0]) @ jnp.exp(W0[i]), 0.0, 1.0)
        h = jax.nn.relu((h - b1[i, 0]) @ W1[i])
        h = jax.nn.relu((h - b2[i, 0]) @ W2[i])
        outs.append(h @ Wl[i])
    f_out = jnp.concatenate(outs, axis=-1)
    return f_out.sum(axis=-1) + bias, f_out


# ---------------------------------------------------------------------------
# Parameter construction (matches the PyTorch initializers in spirit).
# ---------------------------------------------------------------------------
def _trunc_normal(key, shape, mean=0.0, std=1.0):
    return mean + std * jax.random.truncated_normal(key, -2.0, 2.0, shape, jnp.float32)


def _xavier_uniform(key, shape):
    fan_in, fan_out = shape[-2], shape[-1]
    limit = (6.0 / (fan_in + fan_out)) ** 0.5
    return jax.random.uniform(key, shape, jnp.float32, -limit, limit)


def make_params(key, input_size, shallow_units, hidden_units):
    F, S = input_size, shallow_units
    H1, H2 = hidden_units
    ks = jax.random.split(key, 8)
    W0 = _trunc_normal(ks[0], (F, S, S), mean=4.0, std=0.5)   # ExU weight
    b0 = _trunc_normal(ks[1], (F, 1, S), std=0.5)             # ExU bias
    W1 = _xavier_uniform(ks[2], (F, S, H1))                   # ReLU layer 1
    b1 = _trunc_normal(ks[3], (F, 1, S), std=0.5)
    W2 = _xavier_uniform(ks[4], (F, H1, H2))                  # ReLU layer 2
    b2 = _trunc_normal(ks[5], (F, 1, H1), std=0.5)
    Wl = _xavier_uniform(ks[6], (F, H2, 1))                   # per-feature linear head
    bias = jnp.zeros((1,), jnp.float32)                       # NAM output bias
    return (W0, b0, W1, b1, W2, b2, Wl, bias)


if __name__ == "__main__":
    S, H1, H2 = 32, 64, 32
    key = jax.random.PRNGKey(0)
    fwd = jax.jit(nam_forward)

    # Case 1: tiny shapes (B=8, F=4).  Case 2: exercises the batch grid axis
    # (B=512 -> two 256-row batch tiles) and, on <=v5 chips, G>1 feature groups.
    for B, F in [(8, 4), (512, 8)]:
        key, k_x, k_p = jax.random.split(key, 3)
        x = jax.random.normal(k_x, (B, F), jnp.float32)
        params = make_params(k_p, F, S, (H1, H2))

        sum_out, f_out = fwd(x, params)
        jax.block_until_ready((sum_out, f_out))

        sum_ref, f_ref = nam_reference(x, params)
        assert sum_out.shape == (B,) and f_out.shape == (B, F)
        # Tolerance 5e-4: the rank-1 ExU rewrite and bias folding re-associate
        # fp32 sums whose intermediate magnitudes reach ~1e3 (exp(W0) ~ e^4),
        # so bit-level 1e-4 agreement with the naive ordering is not guaranteed.
        assert jnp.allclose(f_out, f_ref, rtol=5e-4, atol=5e-4), "f_out mismatch"
        assert jnp.allclose(sum_out, sum_ref, rtol=5e-4, atol=5e-4), "sum mismatch"

    # TODO(synk): dropout layers are identity here (p=0.0 defaults / eval mode);
    # the 'few-to-one' pandas-based connectivity branch is not implemented.
    print("KERNEL_OK")
</pallas_src>

<mosaic_0001>
module attributes {stable_mosaic.version = 11 : i64} {
  func.func @_nam_kernel(%arg0: i32, %arg1: i32, %arg2: memref<1x8x4xf32, #tpu.memory_space<vmem>>, %arg3: memref<1x4x128xf32, #tpu.memory_space<vmem>>, %arg4: memref<1x1x128xf32, #tpu.memory_space<vmem>>, %arg5: memref<1x128x256xf32, #tpu.memory_space<vmem>>, %arg6: memref<1x1x256xf32, #tpu.memory_space<vmem>>, %arg7: memref<1x256x128xf32, #tpu.memory_space<vmem>>, %arg8: memref<1x1x128xf32, #tpu.memory_space<vmem>>, %arg9: memref<1x128x4xf32, #tpu.memory_space<vmem>>, %arg10: memref<1x8x4xf32, #tpu.memory_space<vmem>>) attributes {dimension_semantics = [#tpu.dimension_semantics<parallel>, #tpu.dimension_semantics<parallel>], iteration_bounds = array<i64: 1, 1>, scalar_prefetch = 0 : i64, scratch_operands = 0 : i64, tpu.core_type = #tpu.core_type<tc>, window_params = [{transform_indices = @transform_0, window_bounds = array<i64: 1, 8, 4>}, {transform_indices = @transform_1, window_bounds = array<i64: 1, 4, 128>}, {transform_indices = @transform_2, window_bounds = array<i64: 1, 1, 128>}, {transform_indices = @transform_3, window_bounds = array<i64: 1, 128, 256>}, {transform_indices = @transform_4, window_bounds = array<i64: 1, 1, 256>}, {transform_indices = @transform_5, window_bounds = array<i64: 1, 256, 128>}, {transform_indices = @transform_6, window_bounds = array<i64: 1, 1, 128>}, {transform_indices = @transform_7, window_bounds = array<i64: 1, 128, 4>}, {transform_indices = @transform_8, window_bounds = array<i64: 1, 8, 4>}]} {
    %c0 = arith.constant 0 : index
    %c0_0 = arith.constant 0 : index
    %c0_1 = arith.constant 0 : index
    %0 = vector.load %arg2[%c0, %c0_0, %c0_1] : memref<1x8x4xf32, #tpu.memory_space<vmem>>, vector<1x8x4xf32>
    %1 = vector.shape_cast %0 : vector<1x8x4xf32> to vector<8x4xf32>
    %c0_2 = arith.constant 0 : index
    %c0_3 = arith.constant 0 : index
    %c0_4 = arith.constant 0 : index
    %2 = vector.load %arg3[%c0_2, %c0_3, %c0_4] : memref<1x4x128xf32, #tpu.memory_space<vmem>>, vector<1x4x128xf32>
    %3 = vector.shape_cast %2 : vector<1x4x128xf32> to vector<4x128xf32>
    %cst = arith.constant dense<0.000000e+00> : vector<8x128xf32>
    %4 = tpu.matmul %1, %3, %cst {dimension_numbers = #tpu.dot_dimension_numbers<[1], [0], [0], [1], [0, 0, 1, 1], [], []>} : vector<8x4xf32>, vector<4x128xf32>, vector<8x128xf32> -> vector<8x128xf32>
    %c0_5 = arith.constant 0 : index
    %c0_6 = arith.constant 0 : index
    %c0_7 = arith.constant 0 : index
    %5 = vector.load %arg4[%c0_5, %c0_6, %c0_7] : memref<1x1x128xf32, #tpu.memory_space<vmem>>, vector<1x1x128xf32>
    %6 = vector.shape_cast %5 : vector<1x1x128xf32> to vector<1x128xf32>
    %7 = vector.broadcast %6 : vector<1x128xf32> to vector<8x128xf32>
    %8 = arith.addf %4, %7 : vector<8x128xf32>
    %cst_8 = arith.constant 0.000000e+00 : f32
    %cst_9 = arith.constant 1.000000e+00 : f32
    %9 = vector.broadcast %cst_8 : f32 to vector<8x128xf32>
    %10 = arith.maximumf %9, %8 : vector<8x128xf32>
    %11 = vector.broadcast %cst_9 : f32 to vector<8x128xf32>
    %12 = arith.minimumf %11, %10 : vector<8x128xf32>
    %c0_10 = arith.constant 0 : index
    %c0_11 = arith.constant 0 : index
    %c0_12 = arith.constant 0 : index
    %13 = vector.load %arg5[%c0_10, %c0_11, %c0_12] : memref<1x128x256xf32, #tpu.memory_space<vmem>>, vector<1x128x256xf32>
    %14 = vector.shape_cast %13 : vector<1x128x256xf32> to vector<128x256xf32>
    %cst_13 = arith.constant dense<0.000000e+00> : vector<8x256xf32>
    %15 = tpu.matmul %12, %14, %cst_13 {dimension_numbers = #tpu.dot_dimension_numbers<[1], [0], [0], [1], [0, 0, 1, 1], [], []>} : vector<8x128xf32>, vector<128x256xf32>, vector<8x256xf32> -> vector<8x256xf32>
    %c0_14 = arith.constant 0 : index
    %c0_15 = arith.constant 0 : index
    %c0_16 = arith.constant 0 : index
    %16 = vector.load %arg6[%c0_14, %c0_15, %c0_16] : memref<1x1x256xf32, #tpu.memory_space<vmem>>, vector<1x1x256xf32>
    %17 = vector.shape_cast %16 : vector<1x1x256xf32> to vector<1x256xf32>
    %18 = vector.broadcast %17 : vector<1x256xf32> to vector<8x256xf32>
    %19 = arith.addf %15, %18 : vector<8x256xf32>
    %cst_17 = arith.constant 0.000000e+00 : f32
    %20 = vector.broadcast %cst_17 : f32 to vector<8x256xf32>
    %21 = arith.maximumf %19, %20 : vector<8x256xf32>
    %c0_18 = arith.constant 0 : index
    %c0_19 = arith.constant 0 : index
    %c0_20 = arith.constant 0 : index
    %22 = vector.load %arg7[%c0_18, %c0_19, %c0_20] : memref<1x256x128xf32, #tpu.memory_space<vmem>>, vector<1x256x128xf32>
    %23 = vector.shape_cast %22 : vector<1x256x128xf32> to vector<256x128xf32>
    %cst_21 = arith.constant dense<0.000000e+00> : vector<8x128xf32>
    %24 = tpu.matmul %21, %23, %cst_21 {dimension_numbers = #tpu.dot_dimension_numbers<[1], [0], [0], [1], [0, 0, 1, 1], [], []>} : vector<8x256xf32>, vector<256x128xf32>, vector<8x128xf32> -> vector<8x128xf32>
    %c0_22 = arith.constant 0 : index
    %c0_23 = arith.constant 0 : index
    %c0_24 = arith.constant 0 : index
    %25 = vector.load %arg8[%c0_22, %c0_23, %c0_24] : memref<1x1x128xf32, #tpu.memory_space<vmem>>, vector<1x1x128xf32>
    %26 = vector.shape_cast %25 : vector<1x1x128xf32> to vector<1x128xf32>
    %27 = vector.broadcast %26 : vector<1x128xf32> to vector<8x128xf32>
    %28 = arith.addf %24, %27 : vector<8x128xf32>
    %cst_25 = arith.constant 0.000000e+00 : f32
    %29 = vector.broadcast %cst_25 : f32 to vector<8x128xf32>
    %30 = arith.maximumf %28, %29 : vector<8x128xf32>
    %c0_26 = arith.constant 0 : index
    %c0_27 = arith.constant 0 : index
    %c0_28 = arith.constant 0 : index
    %31 = vector.load %arg9[%c0_26, %c0_27, %c0_28] : memref<1x128x4xf32, #tpu.memory_space<vmem>>, vector<1x128x4xf32>
    %32 = vector.shape_cast %31 : vector<1x128x4xf32> to vector<128x4xf32>
    %cst_29 = arith.constant dense<0.000000e+00> : vector<8x4xf32>
    %33 = tpu.matmul %30, %32, %cst_29 {dimension_numbers = #tpu.dot_dimension_numbers<[1], [0], [0], [1], [0, 0, 1, 1], [], []>} : vector<8x128xf32>, vector<128x4xf32>, vector<8x4xf32> -> vector<8x4xf32>
    %c0_30 = arith.constant 0 : index
    %c0_31 = arith.constant 0 : index
    %c0_32 = arith.constant 0 : index
    %34 = vector.load %arg10[%c0_30, %c0_31, %c0_32] : memref<1x8x4xf32, #tpu.memory_space<vmem>>, vector<1x8x4xf32>
    %35 = vector.shape_cast %34 : vector<1x8x4xf32> to vector<8x4xf32>
    %36 = vector.shape_cast %33 : vector<8x4xf32> to vector<1x8x4xf32>
    tpu.vector_store %arg10[%c0_30, %c0_31, %c0_32], %36 {strides = array<i32>} : memref<1x8x4xf32, #tpu.memory_space<vmem>>, vector<1x8x4xf32>,
    return
  }
  func.func @transform_0(%arg0: i32, %arg1: i32) -> (i32, i32, i32) {
    %c0_i32 = arith.constant 0 : i32
    %c0_i32_0 = arith.constant 0 : i32
    return %arg0, %arg1, %c0_i32 : i32, i32, i32
  }
  func.func @transform_1(%arg0: i32, %arg1: i32) -> (i32, i32, i32) {
    %c0_i32 = arith.constant 0 : i32
    %c0_i32_0 = arith.constant 0 : i32
    %c0_i32_1 = arith.constant 0 : i32
    return %arg0, %c0_i32, %c0_i32_0 : i32, i32, i32
  }
  func.func @transform_2(%arg0: i32, %arg1: i32) -> (i32, i32, i32) {
    %c0_i32 = arith.constant 0 : i32
    %c0_i32_0 = arith.constant 0 : i32
    %c0_i32_1 = arith.constant 0 : i32
    return %arg0, %c0_i32, %c0_i32_0 : i32, i32, i32
  }
  func.func @transform_3(%arg0: i32, %arg1: i32) -> (i32, i32, i32) {
    %c0_i32 = arith.constant 0 : i32
    %c0_i32_0 = arith.constant 0 : i32
    %c0_i32_1 = arith.constant 0 : i32
    return %arg0, %c0_i32, %c0_i32_0 : i32, i32, i32
  }
  func.func @transform_4(%arg0: i32, %arg1: i32) -> (i32, i32, i32) {
    %c0_i32 = arith.constant 0 : i32
    %c0_i32_0 = arith.constant 0 : i32
    %c0_i32_1 = arith.constant 0 : i32
    return %arg0, %c0_i32, %c0_i32_0 : i32, i32, i32
  }
  func.func @transform_5(%arg0: i32, %arg1: i32) -> (i32, i32, i32) {
    %c0_i32 = arith.constant 0 : i32
    %c0_i32_0 = arith.constant 0 : i32
    %c0_i32_1 = arith.constant 0 : i32
    return %arg0, %c0_i32, %c0_i32_0 : i32, i32, i32
  }
  func.func @transform_6(%arg0: i32, %arg1: i32) -> (i32, i32, i32) {
    %c0_i32 = arith.constant 0 : i32
    %c0_i32_0 = arith.constant 0 : i32
    %c0_i32_1 = arith.constant 0 : i32
    return %arg0, %c0_i32, %c0_i32_0 : i32, i32, i32
  }
  func.func @transform_7(%arg0: i32, %arg1: i32) -> (i32, i32, i32) {
    %c0_i32 = arith.constant 0 : i32
    %c0_i32_0 = arith.constant 0 : i32
    %c0_i32_1 = arith.constant 0 : i32
    return %arg0, %c0_i32, %c0_i32_0 : i32, i32, i32
  }
  func.func @transform_8(%arg0: i32, %arg1: i32) -> (i32, i32, i32) {
    %c0_i32 = arith.constant 0 : i32
    %c0_i32_0 = arith.constant 0 : i32
    return %arg0, %arg1, %c0_i32 : i32, i32, i32
  }
}

</mosaic_0001>

<bundles_post_ra>
// kernel: neg.6
= control target key start
LH: loop header
LB: loop body
LE: loop exit
PB: predicated region body
PF: predicated region fallthrough
CT: control target
= control target key end

     0   :  { %s24_s0 = inlined_call_operand.vmem [shape: f32[4,32], index: 0, kind: input, shape index: {}]   ;;  %s25_s1 = inlined_call_operand.vmem [shape: f32[4,32], index: 1, kind: output, shape index: {}]  }
   0x1   :  { %v2_v0 = vld [vmem:[%s24_s0] sm:$0xf] }
   0x2   :  { %v5_v1 = vxor.u32 2147483648, %v2_v0 }
   0x4   :  { %7 = vst [vmem:[%s25_s1] sm:$0xf] %v5_v1 }

// kernel: neg.7
= control target key start
LH: loop header
LB: loop body
LE: loop exit
PB: predicated region body
PF: predicated region fallthrough
CT: control target
= control target key end

     0   :  { %s24_s0 = inlined_call_operand.vmem [shape: f32[4,64], index: 0, kind: input, shape index: {}]   ;;  %s25_s1 = inlined_call_operand.vmem [shape: f32[4,64], index: 1, kind: output, shape index: {}]  }
   0x1   :  { %v2_v0 = vld [vmem:[%s24_s0] sm:$0xf] }
   0x2   :  { %v5_v1 = vxor.u32 2147483648, %v2_v0 }
   0x4   :  { %7 = vst [vmem:[%s25_s1] sm:$0xf] %v5_v1 }

// kernel: nam_forward.1
= control target key start
LH: loop header
LB: loop body
LE: loop exit
PB: predicated region body
PF: predicated region fallthrough
CT: control target
= control target key end

     0   :  { %vm39_vm0 = vcmask 1043456   ;;  %vm35_vm1 = vcmask 31744   ;;  %s572_s1 = inlined_call_operand.vmem [shape: f32[1,4,128], index: 1, kind: input, shape index: {}]   ;;  %s573_s0 = inlined_call_operand.vmem [shape: f32[1,8,4], index: 0, kind: input, shape index: {}]   ;;  %s574_s3 = inlined_call_operand.vmem [shape: f32[1,128,256], index: 3, kind: input, shape index: {}]   ;;  %s575_s2 = inlined_call_operand.vmem [shape: f32[1,1,128], index: 2, kind: input, shape index: {}]   ;;  %s576_s5 = inlined_call_operand.vmem [shape: f32[1,256,128], index: 5, kind: input, shape index: {}]   ;;  %s577_s6 = inlined_call_operand.vmem [shape: f32[1,1,128], index: 6, kind: input, shape index: {}]   ;;  %s578_s7 = inlined_call_operand.vmem [shape: f32[1,128,4], index: 7, kind: input, shape index: {}]   ;;  %s579_s4 = inlined_call_operand.vmem [shape: f32[1,1,256], index: 4, kind: input, shape index: {}]   ;;  %s580_s8 = inlined_call_operand.vmem [shape: f32[1,8,4], index: 8, kind: output, shape index: {}]  }
   0x1   :  { %v30_v0 = vld [vmem:[%s572_s1] sm:$0xf]  ;;  %v95_v2 = vld [vmem:[%s574_s3 + $0xf0] sm:$0xff]  ;;  %v96_v3 = vld [vmem:[%s574_s3 + $0xf8] sm:$0xff] }
   0x2   :  { %v29_v1 = vld [vmem:[%s573_s0] sm:$0xff]  ;;  %263 = vmatpush.msk.msra.mxu0 %vm39_vm0, %v30_v0  ;;  %103 = vmatpush.msra.mxu1 %v95_v2  ;;  %v94_v5 = vld [vmem:[%s574_s3 + $0xe8] sm:$0xff]  ;;  %v91_v6 = vld [vmem:[%s574_s3 + $0xd0] sm:$0xff] }
   0x3   :  { %v93_v4 = vld [vmem:[%s574_s3 + $0xe0] sm:$0xff]  ;;  %264 = vmatmul.msk.f32.vlgmr.msra.gmra.mxu0 %vm35_vm1, %v29_v1  ;;  %123 = vmatpush.msra.mxu2 %v96_v3  ;;  %v92_v7 = vld [vmem:[%s574_s3 + $0xd8] sm:$0xff]  ;;  %v90_v9 = vld [vmem:[%s574_s3 + $0xc8] sm:$0xff] }
   0x4   :  { %104 = vmatpush.msra.mxu1 %v93_v4  ;;  %v89_v8 = vld [vmem:[%s574_s3 + $0xc0] sm:$0xff]  ;;  %v87_v10 = vld [vmem:[%s574_s3 + $0xb0] sm:$0xff]  ;;  %v88_v11 = vld [vmem:[%s574_s3 + $0xb8] sm:$0xff] }
   0x5   :  { %124 = vmatpush.msra.mxu2 %v94_v5  ;;  %v85_v12 = vld [vmem:[%s574_s3 + $0xa0] sm:$0xff]  ;;  %v86_v13 = vld [vmem:[%s574_s3 + $0xa8] sm:$0xff]  ;;  %v83_v14 = vld [vmem:[%s574_s3 + $0x90] sm:$0xff] }
   0x6   :  { %105 = vmatpush.msra.mxu1 %v91_v6  ;;  %v84_v15 = vld [vmem:[%s574_s3 + $0x98] sm:$0xff]  ;;  %v81_v16 = vld [vmem:[%s574_s3 + $0x80] sm:$0xff]  ;;  %v82_v17 = vld [vmem:[%s574_s3 + $0x88] sm:$0xff] }
   0x7   :  { %125 = vmatpush.msra.mxu2 %v92_v7  ;;  %v79_v18 = vld [vmem:[%s574_s3 + $0x70] sm:$0xff]  ;;  %v80_v19 = vld [vmem:[%s574_s3 + $0x78] sm:$0xff]  ;;  %v77_v20 = vld [vmem:[%s574_s3 + $0x60] sm:$0xff] }
   0x8   :  { %106 = vmatpush.msra.mxu1 %v89_v8  ;;  %v78_v21 = vld [vmem:[%s574_s3 + $0x68] sm:$0xff]  ;;  %v75_v22 = vld [vmem:[%s574_s3 + $0x50] sm:$0xff]  ;;  %v76_v23 = vld [vmem:[%s574_s3 + $0x58] sm:$0xff] }
   0x9   :  { %126 = vmatpush.msra.mxu2 %v90_v9  ;;  %v73_v24 = vld [vmem:[%s574_s3 + $0x40] sm:$0xff]  ;;  %v74_v25 = vld [vmem:[%s574_s3 + $0x48] sm:$0xff]  ;;  %v71_v26 = vld [vmem:[%s574_s3 + $0x30] sm:$0xff] }
   0xa   :  { %107 = vmatpush.msra.mxu1 %v87_v10  ;;  %v72_v27 = vld [vmem:[%s574_s3 + $0x38] sm:$0xff]  ;;  %v69_v28 = vld [vmem:[%s574_s3 + $0x20] sm:$0xff]  ;;  %v70_v29 = vld [vmem:[%s574_s3 + $0x28] sm:$0xff] }
   0xb   :  { %127 = vmatpush.msra.mxu2 %v88_v11  ;;  %v67_v30 = vld [vmem:[%s574_s3 + $0x10] sm:$0xff]  ;;  %v68_v31 = vld [vmem:[%s574_s3 + $0x18] sm:$0xff]  ;;  %v65_v32 = vld [vmem:[%s574_s3] sm:$0xff] }
   0xc   :  { %108 = vmatpush.msra.mxu1 %v85_v12  ;;  %v66_v33 = vld [vmem:[%s574_s3 + $0x8] sm:$0xff]  ;;  %v160_v34 = vld [vmem:[%s576_s5 + $0x78] sm:$0xff]  ;;  %v159_v35 = vld [vmem:[%s576_s5 + $0x70] sm:$0xff] }
   0xd   :  { %128 = vmatpush.msra.mxu2 %v86_v13  ;;  %181 = vmatpush.msra.mxu3 %v160_v34  ;;  %v176_v36 = vld [vmem:[%s576_s5 + $0xf8] sm:$0xff]  ;;  %v158_v37 = vld [vmem:[%s576_s5 + $0x68] sm:$0xff]  ;;  %v175_v38 = vld [vmem:[%s576_s5 + $0xf0] sm:$0xff] }
   0xe   :  { %109 = vmatpush.msra.mxu1 %v83_v14  ;;  %201 = vmatpush.msrb.mxu0 %v176_v36  ;;  %v174_v39 = vld [vmem:[%s576_s5 + $0xe8] sm:$0xff]  ;;  %v157_v40 = vld [vmem:[%s576_s5 + $0x60] sm:$0xff]  ;;  %v156_v42 = vld [vmem:[%s576_s5 + $0x58] sm:$0xff] }
   0xf   :  { %129 = vmatpush.msra.mxu2 %v84_v15  ;;  %182 = vmatpush.msra.mxu3 %v159_v35  ;;  %v173_v41 = vld [vmem:[%s576_s5 + $0xe0] sm:$0xff]  ;;  %v172_v43 = vld [vmem:[%s576_s5 + $0xd8] sm:$0xff]  ;;  %v155_v44 = vld [vmem:[%s576_s5 + $0x50] sm:$0xff] }
  0x10   :  { %110 = vmatpush.msra.mxu1 %v81_v16  ;;  %202 = vmatpush.msrb.mxu0 %v175_v38  ;;  %v171_v45 = vld [vmem:[%s576_s5 + $0xd0] sm:$0xff]  ;;  %v154_v46 = vld [vmem:[%s576_s5 + $0x48] sm:$0xff]  ;;  %v153_v48 = vld [vmem:[%s576_s5 + $0x40] sm:$0xff] }
  0x11   :  { %130 = vmatpush.msra.mxu2 %v82_v17  ;;  %183 = vmatpush.msra.mxu3 %v158_v37  ;;  %v170_v47 = vld [vmem:[%s576_s5 + $0xc8] sm:$0xff]  ;;  %v169_v49 = vld [vmem:[%s576_s5 + $0xc0] sm:$0xff]  ;;  %v152_v50 = vld [vmem:[%s576_s5 + $0x38] sm:$0xff] }
  0x12   :  { %111 = vmatpush.msra.mxu1 %v79_v18  ;;  %203 = vmatpush.msrb.mxu0 %v174_v39  ;;  %v168_v51 = vld [vmem:[%s576_s5 + $0xb8] sm:$0xff]  ;;  %v151_v52 = vld [vmem:[%s576_s5 + $0x30] sm:$0xff]  ;;  %v150_v54 = vld [vmem:[%s576_s5 + $0x28] sm:$0xff] }
  0x13   :  { %131 = vmatpush.msra.mxu2 %v80_v19  ;;  %184 = vmatpush.msra.mxu3 %v157_v40  ;;  %v167_v53 = vld [vmem:[%s576_s5 + $0xb0] sm:$0xff]  ;;  %v149_v55 = vld [vmem:[%s576_s5 + $0x20] sm:$0xff]  ;;  %v148_v57 = vld [vmem:[%s576_s5 + $0x18] sm:$0xff] }
  0x14   :  { %112 = vmatpush.msra.mxu1 %v77_v20  ;;  %204 = vmatpush.msrb.mxu0 %v173_v41  ;;  %v265_v56 = vld [vmem:[%s575_s2] ss:$0 sm:$0xff]  ;;  %v147_v62 = vld [vmem:[%s576_s5 + $0x10] sm:$0xff]  ;;  %v166_v63 = vld [vmem:[%s576_s5 + $0xa8] sm:$0xff] }
  0x15   :  { %132 = vmatpush.msra.mxu2 %v78_v21  ;;  %185 = vmatpush.msra.mxu3 %v156_v42  ;;  %v146_v0 = vld [vmem:[%s576_s5 + $0x8] sm:$0xff]  ;;  %v165_v1 = vld [vmem:[%s576_s5 + $0xa0] sm:$0xff]  ;;  %v164_v3 = vld [vmem:[%s576_s5 + $0x98] sm:$0xff] }
  0x16   :  { %113 = vmatpush.msra.mxu1 %v75_v22  ;;  %205 = vmatpush.msrb.mxu0 %v172_v43  ;;  %v145_v2 = vld [vmem:[%s576_s5] sm:$0xff]  ;;  %v163_v4 = vld [vmem:[%s576_s5 + $0x90] sm:$0xff]  ;;  %v162_v5 = vld [vmem:[%s576_s5 + $0x88] sm:$0xff] }
  0x17   :  { %133 = vmatpush.msra.mxu2 %v76_v23  ;;  %186 = vmatpush.msra.mxu3 %v155_v44  ;;  %v161_v6 = vld [vmem:[%s576_s5 + $0x80] sm:$0xff]  ;;  %v237_v7 = vld [vmem:[%s578_s7 + $0x78] sm:$0xff]  ;;  %v236_v8 = vld [vmem:[%s578_s7 + $0x70] sm:$0xff] }
  0x18   :  { %114 = vmatpush.msra.mxu1 %v73_v24  ;;  %206 = vmatpush.msrb.mxu0 %v171_v45  ;;  %v235_v9 = vld [vmem:[%s578_s7 + $0x68] sm:$0xff]  ;;  %v234_v10 = vld [vmem:[%s578_s7 + $0x60] sm:$0xff]  ;;  %v233_v11 = vld [vmem:[%s578_s7 + $0x58] sm:$0xff] }
  0x19   :  { %134 = vmatpush.msra.mxu2 %v74_v25  ;;  %187 = vmatpush.msra.mxu3 %v154_v46  ;;  %v232_v12 = vld [vmem:[%s578_s7 + $0x50] sm:$0xff]  ;;  %v231_v13 = vld [vmem:[%s578_s7 + $0x48] sm:$0xff]  ;;  %v230_v14 = vld [vmem:[%s578_s7 + $0x40] sm:$0xff] }
  0x1a   :  { %115 = vmatpush.msra.mxu1 %v71_v26  ;;  %207 = vmatpush.msrb.mxu0 %v170_v47  ;;  %v229_v15 = vld [vmem:[%s578_s7 + $0x38] sm:$0xff]  ;;  %v97_v16 = vld [vmem:[%s579_s4] sm:$0x3]  ;;  %v228_v17 = vld [vmem:[%s578_s7 + $0x30] sm:$0xff] }
  0x1b   :  { %135 = vmatpush.msra.mxu2 %v72_v27  ;;  %188 = vmatpush.msra.mxu3 %v153_v48  ;;  %v99_v18 = vperm.slane %v97_v16, 0  ;;  %v227_v19 = vld [vmem:[%s578_s7 + $0x28] sm:$0xff]  ;;  %v226_v20 = vld [vmem:[%s578_s7 + $0x20] sm:$0xff]  ;;  %v100_v24 = vperm.slane %v97_v16, 1 }
  0x1c   :  { %116 = vmatpush.msra.mxu1 %v69_v28  ;;  %208 = vmatpush.msrb.mxu0 %v169_v49  ;;  %v225_v28 = vld [vmem:[%s578_s7 + $0x18] sm:$0xff] }
  0x1d   :  { %136 = vmatpush.msra.mxu2 %v70_v29  ;;  %189 = vmatpush.msra.mxu3 %v152_v50  ;;  %v224_v29 = vld [vmem:[%s578_s7 + $0x10] sm:$0xff] }
  0x1e   :  { %117 = vmatpush.msra.mxu1 %v67_v30  ;;  %209 = vmatpush.msrb.mxu0 %v168_v51  ;;  %v223_v30 = vld [vmem:[%s578_s7 + $0x8] sm:$0xff] }
  0x1f   :  { %137 = vmatpush.msra.mxu2 %v68_v31  ;;  %190 = vmatpush.msra.mxu3 %v151_v52  ;;  %v222_v31 = vld [vmem:[%s578_s7] sm:$0xff] }
  0x20   :  { %118 = vmatpush.msra.mxu1 %v65_v32  ;;  %210 = vmatpush.msrb.mxu0 %v167_v53  ;;  %v266_v32 = vld [vmem:[%s577_s6] ss:$0 sm:$0xff] }
  0x21   :  { %138 = vmatpush.msra.mxu2 %v66_v33  ;;  %191 = vmatpush.msra.mxu3 %v150_v54 }
  0x22   :  { %211 = vmatpush.msrb.mxu0 %v166_v63  ;;  %238 = vmatpush.msrb.mxu1 %v237_v7 }
  0x23   :  { %192 = vmatpush.msra.mxu3 %v149_v55 }
  0x24   :  { %212 = vmatpush.msrb.mxu0 %v165_v1  ;;  %239 = vmatpush.msrb.mxu1 %v236_v8 }
  0x25   :  { %193 = vmatpush.msra.mxu3 %v148_v57 }
  0x26   :  { %213 = vmatpush.msrb.mxu0 %v164_v3  ;;  %240 = vmatpush.msrb.mxu1 %v235_v9 }
  0x27   :  { %194 = vmatpush.msra.mxu3 %v147_v62 }
  0x28   :  { %214 = vmatpush.msrb.mxu0 %v163_v4  ;;  %241 = vmatpush.msrb.mxu1 %v234_v10 }
  0x29   :  { %195 = vmatpush.msra.mxu3 %v146_v0 }
  0x2a   :  { %215 = vmatpush.msrb.mxu0 %v162_v5  ;;  %242 = vmatpush.msrb.mxu1 %v233_v11 }
  0x2b   :  { %196 = vmatpush.msra.mxu3 %v145_v2 }
  0x2c   :  { %216 = vmatpush.msrb.mxu0 %v161_v6  ;;  %243 = vmatpush.msrb.mxu1 %v232_v12 }
  0x2e   :  { %244 = vmatpush.msrb.mxu1 %v231_v13 }
  0x30   :  { %245 = vmatpush.msrb.mxu1 %v230_v14 }
  0x32   :  { %246 = vmatpush.msrb.mxu1 %v229_v15 }
  0x34   :  { %247 = vmatpush.msrb.mxu1 %v228_v17 }
  0x36   :  { %248 = vmatpush.msrb.mxu1 %v227_v19 }
  0x38   :  { %249 = vmatpush.msrb.mxu1 %v226_v20 }
  0x3a   :  { %250 = vmatpush.msrb.mxu1 %v225_v28 }
  0x3c   :  { %251 = vmatpush.msrb.mxu1 %v224_v29 }
  0x3e   :  { %252 = vmatpush.msrb.mxu1 %v223_v30 }
  0x40   :  { %253 = vmatpush.msrb.mxu1 %v222_v31 }
  0x80   :  { %v60_v58 = vpop.f32.mrf.mxu0 }
  0x81   :  { %v61_v59 = vadd.f32 %v265_v56, %v60_v58 }
  0x83   :  { %v63_v60 = vmax.f32 %v61_v59, 0.0 }
  0x85   :  { %v64_v61 = vmin.f32 %v63_v60, 1.0 }
  0x87   :  { %119 = vmatmul.f32.vlgmr.msra.gmra.mxu1 %v64_v61  ;;  %139 = vmatmul.f32.vlgmr.msra.gmra.mxu2 %v64_v61 }
 0x104   :  { %v120_v21 = vpop.f32.mrf.mxu1 }
 0x105   :  { %v121_v22 = vadd.f32 %v120_v21, %v99_v18 }
 0x107   :  { %v143_v23 = vmax.f32 %v121_v22, 0.0 }
 0x109   :  { %197 = vmatmul.f32.vlgmr.msra.gmra.mxu3 %v143_v23 }
 0x10a   :  { %v140_v25 = vpop.f32.mrf.mxu2 }
 0x10b   :  { %v141_v26 = vadd.f32 %v140_v25, %v100_v24 }
 0x10d   :  { %v144_v27 = vmax.f32 %v141_v26, 0.0 }
 0x10f   :  { %217 = vmatmul.f32.vlgmr.msrb.gmra.mxu0 %v144_v27 }
 0x18c   :  { %v198_v33 = vpop.f32.mrf.mxu3  ;;  %v218_v35 = vpop.f32.mrf.mxu0 }
 0x18d   :  { %v199_v34 = vadd.f32 %v266_v32, %v198_v33 }
 0x18f   :  { %v219_v36 = vadd.f32 %v218_v35, %v199_v34 }
 0x191   :  { %v221_v37 = vmax.f32 %v219_v36, 0.0 }
 0x193   :  { %254 = vmatmul.f32.vlgmr.msrb.gmra.mxu1 %v221_v37 }
 0x210   :  { %v255_v38 = vpop.f32.mrf.mxu1 }
 0x211   :  { %258 = vst.msk [vmem:[%s580_s8] sm:$0xff] %vm35_vm1, %v255_v38 }

</bundles_post_ra>
